<compile_context>
chip_gen: v6e
topology: v6e:2x2x1
jax: 0.10.0
libtpu: 0.0.40
codegen_flags: <defaults>
</compile_context>

<pallas_src>
import math

import jax
import jax.numpy as jnp
from jax.experimental import pallas as pl
from jax.experimental.pallas import tpu as pltpu


# Packed-parameter slab (rows x 8 lanes, f32, zero padded):
#   rows  0:8   -> W1 (8,5) in cols 0:5, b1 in col 5, cols 6:8 = 0
#   rows  8:16  -> W2 padded (8,8): rows 0:4 = W2 (out=4,in=8), rows 4:8 = 0
#   rows 16:24  -> b2: col 0 rows 0:4 = b2, rest 0
#   rows 24:36  -> W3 (12,4) in cols 0:4, cols 4:8 = 0
#   rows 40:52  -> b3: col 0 rows 0:12 = b3, rest 0
_P_ROWS = 56
_P_COLS = 8

_D_IN = 5
_D_OUT = 12


def mlp_kernel(x_ref, p_ref, o_ref):
    x = x_ref[...]                 # (5, B_TILE): x^T
    w1 = p_ref[0:8, 0:5]           # (8, 5)
    b1 = p_ref[0:8, 5:6]           # (8, 1)
    w2 = p_ref[8:16, :]            # (8, 8)   rows 4:8 are zero padding
    b2 = p_ref[16:24, 0:1]         # (8, 1)   rows 4:8 are zero padding
    w3 = p_ref[24:36, :]           # (12, 8)  cols 4:8 are zero padding
    b3 = p_ref[40:52, 0:1]         # (12, 1)

    h1 = jnp.maximum(jnp.dot(w1, x, preferred_element_type=jnp.float32) + b1, 0.0)
    h2 = jnp.maximum(jnp.dot(w2, h1, preferred_element_type=jnp.float32) + b2, 0.0)
    h3 = jnp.maximum(jnp.dot(w3, h2, preferred_element_type=jnp.float32) + b3, 0.0)
    o_ref[...] = h3                # (12, B_TILE), all rows valid


def _round_up(a: int, b: int) -> int:
    return (a + b - 1) // b * b


def _cdiv(a: int, b: int) -> int:
    return (a + b - 1) // b


def pack_params(params):
    """Pack torch-layout params (W: (out,in), b: (out,)) into one zero-padded slab."""
    w1, b1, w2, b2, w3, b3 = params
    p = jnp.zeros((_P_ROWS, _P_COLS), jnp.float32)
    p = p.at[0:8, 0:5].set(w1.astype(jnp.float32))
    p = p.at[0:8, 5].set(b1.astype(jnp.float32))
    p = p.at[8:12, 0:8].set(w2.astype(jnp.float32))
    p = p.at[16:20, 0].set(b2.astype(jnp.float32))
    p = p.at[24:36, 0:4].set(w3.astype(jnp.float32))
    p = p.at[40:52, 0].set(b3.astype(jnp.float32))
    return p


def _tile_plan(B: int, max_b_tile: int):
    """Padding-aware tiling: pick tile count first, then a 128-aligned width."""
    B = max(B, 1)
    max_b_tile = max(128, _round_up(min(max_b_tile, 32768), 128))  # v5e VMEM-safe cap
    n_tiles = _cdiv(B, max_b_tile)
    if n_tiles == 1 and B >= 256:
        n_tiles = 2          # v7x megacore: give both TensorCores work
    b_tile = _round_up(_cdiv(B, n_tiles), 128)
    b_pad = n_tiles * b_tile
    return n_tiles, b_tile, b_pad


def simple_model_forward_feature_major(xt, params, *, max_b_tile=16384):
    """Fused MLP, feature-major I/O: xt (5, B) -> (12, B). No wrapper transposes."""
    assert xt.shape[0] == _D_IN
    B = xt.shape[1]
    p = pack_params(params)
    n_tiles, b_tile, b_pad = _tile_plan(B, max_b_tile)

    x_pad = jnp.pad(xt.astype(jnp.float32), ((0, 0), (0, b_pad - B)))  # (5, b_pad)

    cost = pl.CostEstimate(
        flops=2 * (8 * 5 + 8 * 8 + 12 * 8) * b_pad,
        transcendentals=0,
        bytes_accessed=(_D_IN + _D_OUT) * 4 * b_pad + _P_ROWS * _P_COLS * 4 * n_tiles,
    )

    out_t = pl.pallas_call(
        mlp_kernel,
        out_shape=jax.ShapeDtypeStruct((_D_OUT, b_pad), jnp.float32),
        grid=(n_tiles,),
        in_specs=[
            pl.BlockSpec((_D_IN, b_tile), lambda i: (0, i)),          # batch-tiled x^T
            pl.BlockSpec((_P_ROWS, _P_COLS), lambda i: (0, 0)),       # grid-invariant params
        ],
        out_specs=pl.BlockSpec((_D_OUT, b_tile), lambda i: (0, i)),
        compiler_params=pltpu.CompilerParams(
            dimension_semantics=("parallel",)),                        # v7x: both TCs
        cost_estimate=cost,
    )(x_pad, p)

    return out_t[:, :B]                                                # (12, B)


def simple_model_forward(x, params, *, max_b_tile=16384):
    """PyTorch-layout wrapper: x (B, 5) -> (B, 12).

    The transposes here are layout plumbing for the torch contract; callers
    that can keep a (features, batch) layout should use
    simple_model_forward_feature_major to avoid the extra HBM passes.
    """
    out_t = simple_model_forward_feature_major(x.T, params, max_b_tile=max_b_tile)
    return out_t.T                                                     # (B, 12)


def init_params(key):
    """Deterministic init mimicking torch.nn.Linear (uniform +-1/sqrt(fan_in)).

    Torch layout: weights (out_features, in_features), biases (out_features,).
    """
    dims = [(5, 8), (8, 4), (4, 12)]
    params = []
    for fan_in, fan_out in dims:
        key, kw, kb = jax.random.split(key, 3)
        bound = 1.0 / math.sqrt(fan_in)
        w = jax.random.uniform(kw, (fan_out, fan_in), jnp.float32, -bound, bound)
        b = jax.random.uniform(kb, (fan_out,), jnp.float32, -bound, bound)
        params += [w, b]
    return tuple(params)


def reference_forward(x, params):
    w1, b1, w2, b2, w3, b3 = params
    h = jax.nn.relu(x @ w1.T + b1)
    h = jax.nn.relu(h @ w2.T + b2)
    h = jax.nn.relu(h @ w3.T + b3)
    return h


if __name__ == "__main__":
    key = jax.random.PRNGKey(0)
    key, kx = jax.random.split(key)
    params = init_params(key)

    # Small shape consistent with the module (batch=8, in_features=5).
    B = 8
    x = jax.random.normal(kx, (B, 5), jnp.float32)

    out = simple_model_forward(x, params)
    jax.block_until_ready(out)
    ref = reference_forward(x, params)
    assert out.shape == (B, 12)
    assert jnp.allclose(out, ref, atol=2e-5, rtol=2e-5), float(jnp.max(jnp.abs(out - ref)))

    # Exercise the multi-tile batch grid + padding/slicing + feature-major path.
    key, kx2 = jax.random.split(key)
    B2 = 1000
    x2 = jax.random.normal(kx2, (B2, 5), jnp.float32)
    out2 = simple_model_forward(x2, params)
    jax.block_until_ready(out2)
    ref2 = reference_forward(x2, params)
    assert out2.shape == (B2, 12)
    assert jnp.allclose(out2, ref2, atol=2e-5, rtol=2e-5), float(jnp.max(jnp.abs(out2 - ref2)))

    out2_fm = simple_model_forward_feature_major(x2.T, params)
    jax.block_until_ready(out2_fm)
    assert out2_fm.shape == (12, B2)
    assert jnp.allclose(out2_fm.T, ref2, atol=2e-5, rtol=2e-5)

    print("KERNEL_OK")
</pallas_src>

<mosaic_0001>
module attributes {stable_mosaic.version = 11 : i64} {
  func.func @mlp_kernel(%arg0: i32, %arg1: memref<5x128xf32, #tpu.memory_space<vmem>>, %arg2: memref<56x8xf32, #tpu.memory_space<vmem>>, %arg3: memref<12x128xf32, #tpu.memory_space<vmem>>) attributes {dimension_semantics = [#tpu.dimension_semantics<parallel>], iteration_bounds = array<i64: 1>, scalar_prefetch = 0 : i64, scratch_operands = 0 : i64, tpu.core_type = #tpu.core_type<tc>, window_params = [{transform_indices = @transform_0, window_bounds = array<i64: 5, 128>}, {pipeline_mode = #tpu.pipeline_mode<synchronous>, transform_indices = @transform_1, window_bounds = array<i64: 56, 8>}, {transform_indices = @transform_2, window_bounds = array<i64: 12, 128>}]} {
    %c0 = arith.constant 0 : index
    %c0_0 = arith.constant 0 : index
    %0 = vector.load %arg1[%c0, %c0_0] : memref<5x128xf32, #tpu.memory_space<vmem>>, vector<5x128xf32>
    %c0_1 = arith.constant 0 : index
    %c0_2 = arith.constant 0 : index
    %1 = vector.load %arg2[%c0_1, %c0_2] : memref<56x8xf32, #tpu.memory_space<vmem>>, vector<8x5xf32>
    %c0_3 = arith.constant 0 : index
    %c5 = arith.constant 5 : index
    %2 = vector.load %arg2[%c0_3, %c5] : memref<56x8xf32, #tpu.memory_space<vmem>>, vector<8x1xf32>
    %c8 = arith.constant 8 : index
    %c0_4 = arith.constant 0 : index
    %3 = vector.load %arg2[%c8, %c0_4] : memref<56x8xf32, #tpu.memory_space<vmem>>, vector<8x8xf32>
    %c16 = arith.constant 16 : index
    %c0_5 = arith.constant 0 : index
    %4 = vector.load %arg2[%c16, %c0_5] : memref<56x8xf32, #tpu.memory_space<vmem>>, vector<8x1xf32>
    %c24 = arith.constant 24 : index
    %c0_6 = arith.constant 0 : index
    %5 = vector.load %arg2[%c24, %c0_6] : memref<56x8xf32, #tpu.memory_space<vmem>>, vector<12x8xf32>
    %c40 = arith.constant 40 : index
    %c0_7 = arith.constant 0 : index
    %6 = vector.load %arg2[%c40, %c0_7] : memref<56x8xf32, #tpu.memory_space<vmem>>, vector<12x1xf32>
    %cst = arith.constant dense<0.000000e+00> : vector<8x128xf32>
    %7 = tpu.matmul %1, %0, %cst {dimension_numbers = #tpu.dot_dimension_numbers<[1], [0], [0], [1], [0, 0, 1, 1], [], []>} : vector<8x5xf32>, vector<5x128xf32>, vector<8x128xf32> -> vector<8x128xf32>
    %8 = vector.broadcast %2 : vector<8x1xf32> to vector<8x128xf32>
    %9 = arith.addf %7, %8 : vector<8x128xf32>
    %cst_8 = arith.constant 0.000000e+00 : f32
    %10 = vector.broadcast %cst_8 : f32 to vector<8x128xf32>
    %11 = arith.maximumf %9, %10 : vector<8x128xf32>
    %cst_9 = arith.constant dense<0.000000e+00> : vector<8x128xf32>
    %12 = tpu.matmul %3, %11, %cst_9 {dimension_numbers = #tpu.dot_dimension_numbers<[1], [0], [0], [1], [0, 0, 1, 1], [], []>} : vector<8x8xf32>, vector<8x128xf32>, vector<8x128xf32> -> vector<8x128xf32>
    %13 = vector.broadcast %4 : vector<8x1xf32> to vector<8x128xf32>
    %14 = arith.addf %12, %13 : vector<8x128xf32>
    %cst_10 = arith.constant 0.000000e+00 : f32
    %15 = vector.broadcast %cst_10 : f32 to vector<8x128xf32>
    %16 = arith.maximumf %14, %15 : vector<8x128xf32>
    %cst_11 = arith.constant dense<0.000000e+00> : vector<12x128xf32>
    %17 = tpu.matmul %5, %16, %cst_11 {dimension_numbers = #tpu.dot_dimension_numbers<[1], [0], [0], [1], [0, 0, 1, 1], [], []>} : vector<12x8xf32>, vector<8x128xf32>, vector<12x128xf32> -> vector<12x128xf32>
    %18 = vector.broadcast %6 : vector<12x1xf32> to vector<12x128xf32>
    %19 = arith.addf %17, %18 : vector<12x128xf32>
    %cst_12 = arith.constant 0.000000e+00 : f32
    %20 = vector.broadcast %cst_12 : f32 to vector<12x128xf32>
    %21 = arith.maximumf %19, %20 : vector<12x128xf32>
    %c0_13 = arith.constant 0 : index
    %c0_14 = arith.constant 0 : index
    %22 = vector.load %arg3[%c0_13, %c0_14] : memref<12x128xf32, #tpu.memory_space<vmem>>, vector<12x128xf32>
    tpu.vector_store %arg3[%c0_13, %c0_14], %21 {strides = array<i32>} : memref<12x128xf32, #tpu.memory_space<vmem>>, vector<12x128xf32>,
    return
  }
  func.func @transform_0(%arg0: i32) -> (i32, i32) {
    %c0_i32 = arith.constant 0 : i32
    %c0_i32_0 = arith.constant 0 : i32
    return %c0_i32, %arg0 : i32, i32
  }
  func.func @transform_1(%arg0: i32) -> (i32, i32) {
    %c0_i32 = arith.constant 0 : i32
    %c0_i32_0 = arith.constant 0 : i32
    %c0_i32_1 = arith.constant 0 : i32
    return %c0_i32, %c0_i32_0 : i32, i32
  }
  func.func @transform_2(%arg0: i32) -> (i32, i32) {
    %c0_i32 = arith.constant 0 : i32
    %c0_i32_0 = arith.constant 0 : i32
    return %c0_i32, %arg0 : i32, i32
  }
}

</mosaic_0001>

<bundles_post_ra>
// kernel: tpu_custom_call.1
= control target key start
LH: loop header
LB: loop body
LE: loop exit
PB: predicated region body
PF: predicated region fallthrough
CT: control target
= control target key end

     0   :  { %vm28_vm0 = vcmask 1044480   ;;  %v353_v2 = vmov 0.0   ;;  %vm354_vm1 = vmmov 0   ;;  %vm25_vm2 = vcmask 39936   ;;  %s405_s0 = inlined_call_operand.vmem [shape: f32[5,128], index: 0, kind: input, shape index: {}]   ;;  %s406_s1 = inlined_call_operand.vmem [shape: f32[56,8], index: 1, kind: input, shape index: {}]   ;;  %s407_s2 = inlined_call_operand.hbm [shape: f32[12,128], index: 2, kind: output, shape index: {}]  }
   0x1   :  { %v12_v0 = vld [vmem:[%s405_s0] sm:$0x1f]  ;;  %306 = vmatprep.subr.mxu0 %v353_v2  ;;  %308 = vmatprep.mubr.msk.f32.mxu0 %vm354_vm1, %v353_v2 }
   0x2   :  { %v13_v1 = vld [vmem:[%s406_s1] sm:$0xff] }
   0x3   :  { %7 = vsyncpa [#allocation3], 0  ;;  %307 = vmatpush3.msk.msra.mxu0 %vm28_vm0, %v12_v0  ;;  %v355_v3 = vmov 5   ;;  %311 = vmatprep.subr.mxu1 %v353_v2  ;;  %v15_v4 = vld [vmem:[%s406_s1 + $0x10] sm:$0xff]  ;;  %v356_v5 = vmov 0   ;;  %v14_v11 = vld [vmem:[%s406_s1 + $0x8] sm:$0xff] }
   0x4   :  { %328 = vset.pattern.permute.xlu0 %v355_v3  ;;  %309 = vmatmul.mubr.msk.f32.vlgmr.msra.gmra.mxu0 %vm25_vm2, %v13_v1  ;;  %vm108_vm3 = vcmask 64512   ;;  %v16_v12 = vld [vmem:[%s406_s1 + $0x18] sm:$0xff]  ;;  %v18_v13 = vld [vmem:[%s406_s1 + $0x28] sm:$0xff]  ;;  %v19_v14 = vld [vmem:[%s406_s1 + $0x30] sm:$0xf]  ;;  %s357_s24 = smov [#allocation2]  }
   0x5   :  { %22 = vperm.xlu0 %328, %v13_v1   ;;  %313 = vmatprep.mubr.msk.f32.mxu1 %vm354_vm1, %v353_v2  ;;  %v17_v20 = vld [vmem:[%s406_s1 + $0x20] sm:$0xf]  ;;  %s283_s25 = sshll.u32 %s357_s24, 4  ;;  %s284_s25 = int_to_ptr.vmem [resolvable:$true] %s283_s25 }
   0x6   :  { %330 = vset.pattern.permute.xlu1 %v356_v5  ;;  %318 = vmatprep.mubr.msk.f32.mxu0 %vm108_vm3, %v16_v12  ;;  %s331_s26 = scalar_lea.vmem %s284_s25, 256  ;;  %p336_p1 = scmp.lt.s32.totalorder %s284_s25, %s284_s25 }
   0x7   :  { %185 = vperm.xlu1 %330, %v18_v13   ;;  %p332_p0 = scmp.ne.s32.totalorder %s284_s25, %s331_s26  ;;  %p337_p2 = scmp.lt.s32.totalorder %s331_s26, %s331_s26 }
   0x9   :  { %329 = vset.pattern.permute.xlu0 %v356_v5  ;;  %p338_p3 = por %p337_p2, %p336_p1 }
   0xa   :  { %105 = vperm.xlu0 %329, %v15_v4  }
   0xb   :  { %190 = vperm.xlu1 %330, %v19_v14   ;;  %p339_p4 = pnand %p338_p3, %p332_p0 }
  0x80   :  { %v23_v6 = vpop.permute.xlu0 %22 }
  0x82   :  { %v186_v21 = vpop.permute.xlu1 %185 }
  0x85   :  { %v106_v15 = vpop.permute.xlu0 %105 }
  0x86   :  { %v191_v23 = vpop.permute.xlu1 %190 }
  0xc4   :  { %v98_v7 = vpop.f32.mrf.mxu0 }
  0xc5   :  { %v99_v8 = vadd.f32 %v98_v7, %v23_v6 }
  0xc6   :  { %v310_v9 = vpop.f32.mrf.mxu0 }
  0xc7   :  { %v102_v10 = vmax.f32 %v99_v8, 0.0 }
  0xc9   :  { %312 = vmatpush3.msra.mxu1 %v102_v10 }
  0xca   :  { %314 = vmatmul.mubr.msk.f32.vlgmr.msra.gmra.mxu1 %vm108_vm3, %v14_v11 }
 0x18a   :  { %v178_v16 = vpop.f32.mrf.mxu1 }
 0x18b   :  { %v179_v17 = vadd.f32 %v178_v16, %v106_v15 }
 0x18c   :  { %v315_v18 = vpop.f32.mrf.mxu1 }
 0x18d   :  { %v182_v19 = vmax.f32 %v179_v17, 0.0 }
 0x18f   :  { %316 = vmatprep.subr.mxu0 %v182_v19 }
 0x190   :  { %317 = vmatpush3.msra.mxu0 %v182_v19 }
 0x191   :  { %319 = vmatmul.mubr.msk.f32.vlgmr.msra.gmra.mxu0 %vm108_vm3, %v17_v20 }
 0x251   :  { %v320_v22 = vpop.f32.mrf.mxu0 }
 0x252   :  { %v271_v24 = vadd.f32 %v320_v22, %v191_v23 }
 0x253   :  { %v265_v25 = vpop.f32.mrf.mxu0 }
 0x254   :  { %v275_v26 = vmax.f32 %v271_v24, 0.0  ;;  %v266_v27 = vadd.f32 %v265_v25, %v186_v21 }
 0x256   :  { %277 = vst [vmem:[#allocation2 + $0x8] sm:$0xf] %v275_v26  ;;  %v274_v28 = vmax.f32 %v266_v27, 0.0 }
 0x258   :  { %276 = vst [vmem:[#allocation2] sm:$0xff] %v274_v28 }
 0x259   :  { %342 = shalt.err (!%p339_p4)
}
 0x25a   :  { %s358_s1 = smov 128   ;;  %s359_s27 = smov 8  }
 0x25b   :  { %289 = dma.vmem_to_hbm [thread:$0]  %s284_s25, 256, %s407_s2, [#allocation3], %s358_s1, %s358_s1, %s359_s27  }
 0x25c   :  { %351 = dma.done.wait [#allocation3], 256  }
 0x25d   :  { %352 = vsyncadd [#allocation3], 4294967040 }
 0x25e   :  { %293 = vsyncpa [#allocation3], 1 }

</bundles_post_ra>
